<compile_context>
chip_gen: v5e
topology: v5e:2x2
jax: 0.10.0
libtpu: 0.0.40
codegen_flags: <defaults>
</compile_context>

<pallas_src>
import math

import jax
import jax.numpy as jnp
from jax.experimental import pallas as pl
from jax.experimental.pallas import tpu as pltpu

_LANE = 128
_TB_ALIGN = 16  # bf16 sublane quantum; keeps bf16 output tiles natively tiled


def _round_up(n, m):
    return ((n + m - 1) // m) * m


def _nbytes(shape, dtype):
    return math.prod(shape) * jnp.dtype(dtype).itemsize


# --------------------------------------------------------------------------
# Kernel
# --------------------------------------------------------------------------
def _vae_kernel(x_ref,                       # (TB, D_in_p)   f32 (cast in-kernel)
                w_enc_ref, b_enc_ref,        # (D_in_p, D_enc_p) bf16 / (1, D_enc_p) f32
                w_mv_ref, b_mv_ref,          # (D_enc_p, 2*D_z_p) f32 / (1, 2*D_z_p) f32
                w_dec_ref, b_dec_ref,        # (D_z_p, D_dec_p) bf16 / (1, D_dec_p) f32
                w_out_ref, b_out_ref,        # (D_dec_p, D_out_p) bf16 / (1, D_out_p) f32
                eps_ref,                     # (TB, D_z_p) f32
                x_approx_ref,                # (TB, D_out_p) bf16
                mu_lv_ref):                  # (TB, 2*D_z_p) f32
    d_z_p = eps_ref.shape[-1]

    # ---- encoder: bf16 MXU matmul, f32 accumulate, f32 bias + ReLU ----
    h = jnp.dot(x_ref[...].astype(jnp.bfloat16), w_enc_ref[...],
                preferred_element_type=jnp.float32)
    h = jnp.maximum(h + b_enc_ref[...], 0.0)

    # ---- fused latent heads [mu | logvar]: f32 MXU pass (tiny N; keeps the
    #      exp(0.5*logvar) path free of extra bf16 quantization) ----
    mu_lv = jnp.dot(h, w_mv_ref[...],
                    preferred_element_type=jnp.float32) + b_mv_ref[...]
    mu = mu_lv[:, :d_z_p]          # 128-lane-aligned static slices
    logvar = mu_lv[:, d_z_p:]

    # ---- reparametrize: z = eps * exp(0.5*logvar) + mu  (f32 VPU/EUP) ----
    z = eps_ref[...] * jnp.exp(0.5 * logvar) + mu

    # ---- decoder ----
    hd = jnp.dot(z.astype(jnp.bfloat16), w_dec_ref[...],
                 preferred_element_type=jnp.float32)
    hd = jnp.maximum(hd + b_dec_ref[...], 0.0)
    logits = jnp.dot(hd.astype(jnp.bfloat16), w_out_ref[...],
                     preferred_element_type=jnp.float32) + b_out_ref[...]

    # sigmoid in f32 (portable to v5e EUP); store as bf16 -> half store bytes.
    x_approx_ref[...] = jax.nn.sigmoid(logits).astype(x_approx_ref.dtype)
    mu_lv_ref[...] = mu_lv


# --------------------------------------------------------------------------
# Param packing: pad feature dims to 128 lanes, fuse mu/var head, cast
# enc/dec/out weights to bf16 (head stays f32).
# --------------------------------------------------------------------------
def _pad2d(a, rows, cols):
    pr, pc = rows - a.shape[0], cols - a.shape[1]
    if pr == 0 and pc == 0:
        return a
    return jnp.pad(a, ((0, pr), (0, pc)))


def pack_params(params, D_in, D_enc, D_z, D_dec, D_out):
    D_in_p = _round_up(D_in, _LANE)
    D_enc_p = _round_up(D_enc, _LANE)
    D_z_p = _round_up(D_z, _LANE)
    D_dec_p = _round_up(D_dec, _LANE)
    D_out_p = _round_up(D_out, _LANE)

    # Fused latent head: [mu block | logvar block] on the lane axis, each at a
    # 128-lane-aligned offset so in-kernel slicing is free. Kept in f32.
    w_mv = jnp.concatenate(
        [_pad2d(params["w_mu"], D_enc_p, D_z_p),
         _pad2d(params["w_var"], D_enc_p, D_z_p)], axis=1)
    b_mv = jnp.concatenate(
        [_pad2d(params["b_mu"], 1, D_z_p),
         _pad2d(params["b_var"], 1, D_z_p)], axis=1)

    packed = {
        "w_enc": _pad2d(params["w_enc"], D_in_p, D_enc_p).astype(jnp.bfloat16),
        "b_enc": _pad2d(params["b_enc"], 1, D_enc_p),
        "w_mv": w_mv,
        "b_mv": b_mv,
        "w_dec": _pad2d(params["w_dec"], D_z_p, D_dec_p).astype(jnp.bfloat16),
        "b_dec": _pad2d(params["b_dec"], 1, D_dec_p),
        "w_out": _pad2d(params["w_out"], D_dec_p, D_out_p).astype(jnp.bfloat16),
        "b_out": _pad2d(params["b_out"], 1, D_out_p),
    }
    dims = dict(D_in_p=D_in_p, D_enc_p=D_enc_p, D_z_p=D_z_p,
                D_dec_p=D_dec_p, D_out_p=D_out_p)
    return packed, dims


# --------------------------------------------------------------------------
# Batch tiling: multiple of 16, minimal batch padding, >= 2 tiles for B >= 64
# so the "parallel" grid axis actually feeds both v7x TensorCores.
# --------------------------------------------------------------------------
def _choose_batch_tile(B, batch_tile):
    max_tb = max(_TB_ALIGN, min(batch_tile, _round_up(B, _TB_ALIGN)))
    n_tiles = pl.cdiv(B, max_tb)
    if B >= 64:
        n_tiles = max(n_tiles, 2)
    tb = _round_up(pl.cdiv(B, n_tiles), _TB_ALIGN)
    return tb


# --------------------------------------------------------------------------
# Wrapper
# --------------------------------------------------------------------------
def vae_forward(x, params, eps, *, batch_tile=256, x_approx_dtype=jnp.bfloat16):
    """Fused VAE forward. params hold pre-transposed (in, out) f32 weights and
    (1, out) biases. Returns (x_approx, mu, logvar) like the PyTorch module
    (x_approx in `x_approx_dtype`, bf16 by default for half the HBM store)."""
    B, D_in = x.shape
    D_enc = params["w_enc"].shape[1]
    D_z = params["w_mu"].shape[1]
    D_dec = params["w_dec"].shape[1]
    D_out = params["w_out"].shape[1]

    packed, dims = pack_params(params, D_in, D_enc, D_z, D_dec, D_out)
    D_in_p, D_enc_p = dims["D_in_p"], dims["D_enc_p"]
    D_z_p, D_dec_p, D_out_p = dims["D_z_p"], dims["D_dec_p"], dims["D_out_p"]

    TB = _choose_batch_tile(B, batch_tile)
    B_p = _round_up(B, TB)
    num_tiles = B_p // TB

    # Pad only when misaligned; x stays in its original dtype (bf16 cast is
    # done in-kernel, avoiding a separate wrapper-side HBM pass).
    x_p = _pad2d(x, B_p, D_in_p)
    eps_p = _pad2d(eps.astype(jnp.float32), B_p, D_z_p)

    def resident(shape):                       # weights: same block every step
        return pl.BlockSpec(shape, lambda i: (0, 0))

    in_specs = [
        pl.BlockSpec((TB, D_in_p), lambda i: (i, 0)),              # x
        resident((D_in_p, D_enc_p)), resident((1, D_enc_p)),       # enc
        resident((D_enc_p, 2 * D_z_p)), resident((1, 2 * D_z_p)),  # fused mu/var
        resident((D_z_p, D_dec_p)), resident((1, D_dec_p)),        # dec
        resident((D_dec_p, D_out_p)), resident((1, D_out_p)),      # out
        pl.BlockSpec((TB, D_z_p), lambda i: (i, 0)),               # eps
    ]
    out_specs = (
        pl.BlockSpec((TB, D_out_p), lambda i: (i, 0)),             # x_approx
        pl.BlockSpec((TB, 2 * D_z_p), lambda i: (i, 0)),           # [mu | logvar]
    )

    weight_bytes = sum(int(v.size) * v.dtype.itemsize for v in packed.values())

    # Cost estimate on the *padded* shapes actually executed.
    flops = 2 * B_p * (D_in_p * D_enc_p + D_enc_p * 2 * D_z_p
                       + D_z_p * D_dec_p + D_dec_p * D_out_p)
    transcendentals = B_p * (D_z_p + D_out_p)
    bytes_accessed = int(
        _nbytes((B_p, D_in_p), x_p.dtype) + _nbytes((B_p, D_z_p), jnp.float32)
        + weight_bytes
        + _nbytes((B_p, D_out_p), x_approx_dtype)
        + _nbytes((B_p, 2 * D_z_p), jnp.float32))

    # Per-step VMEM footprint (double-buffered blocks) + headroom; clamped so
    # it stays legal on v7x (64 MiB VMEM) while lifting v5e's 16 MiB default.
    block_bytes = (
        _nbytes((TB, D_in_p), x_p.dtype) + _nbytes((TB, D_z_p), jnp.float32)
        + _nbytes((TB, D_out_p), x_approx_dtype)
        + _nbytes((TB, 2 * D_z_p), jnp.float32) + weight_bytes)
    vmem_limit = int(min(max(2 * block_bytes + (2 << 20), 8 << 20), 32 << 20))

    x_approx_p, mu_lv_p = pl.pallas_call(
        _vae_kernel,
        out_shape=(
            jax.ShapeDtypeStruct((B_p, D_out_p), x_approx_dtype),
            jax.ShapeDtypeStruct((B_p, 2 * D_z_p), jnp.float32),
        ),
        grid_spec=pltpu.PrefetchScalarGridSpec(
            num_scalar_prefetch=0,
            grid=(num_tiles,),
            in_specs=in_specs,
            out_specs=out_specs,
        ),
        compiler_params=pltpu.CompilerParams(
            dimension_semantics=("parallel",),   # v7x: shard batch over 2 TCs
            vmem_limit_bytes=vmem_limit),
        cost_estimate=pl.CostEstimate(
            flops=flops, transcendentals=transcendentals,
            bytes_accessed=bytes_accessed),
    )(x_p,
      packed["w_enc"], packed["b_enc"],
      packed["w_mv"], packed["b_mv"],
      packed["w_dec"], packed["b_dec"],
      packed["w_out"], packed["b_out"],
      eps_p)

    # Slice only what padding / head-fusion requires.
    if B_p == B and D_out_p == D_out:
        x_approx = x_approx_p
    else:
        x_approx = x_approx_p[:B, :D_out]
    mu = mu_lv_p[:B, :D_z]
    logvar = mu_lv_p[:B, D_z_p:D_z_p + D_z]
    return x_approx, mu, logvar


# --------------------------------------------------------------------------
# Params / references
# --------------------------------------------------------------------------
def init_params(key, D_in, D_enc, D_z, D_dec, D_out):
    """Deterministic synthetic params. Weights stored as (in, out), f32."""
    def linear(k, d_in, d_out):
        kw, kb = jax.random.split(k)
        bound = 1.0 / jnp.sqrt(d_in)
        w = jax.random.uniform(kw, (d_in, d_out), jnp.float32, -bound, bound)
        b = jax.random.uniform(kb, (1, d_out), jnp.float32, -bound, bound)
        return w, b

    k1, k2, k3, k4, k5 = jax.random.split(key, 5)
    w_enc, b_enc = linear(k1, D_in, D_enc)
    w_mu, b_mu = linear(k2, D_enc, D_z)
    w_var, b_var = linear(k3, D_enc, D_z)
    w_dec, b_dec = linear(k4, D_z, D_dec)
    w_out, b_out = linear(k5, D_dec, D_out)
    return {
        "w_enc": w_enc, "b_enc": b_enc,
        "w_mu": w_mu, "b_mu": b_mu,
        "w_var": w_var, "b_var": b_var,
        "w_dec": w_dec, "b_dec": b_dec,
        "w_out": w_out, "b_out": b_out,
    }


def vae_reference_f32(x, params, eps):
    """Pure-f32 JAX reference matching the PyTorch forward semantics."""
    h = jax.nn.relu(x @ params["w_enc"] + params["b_enc"])
    mu = h @ params["w_mu"] + params["b_mu"]
    logvar = h @ params["w_var"] + params["b_var"]
    z = eps * jnp.exp(0.5 * logvar) + mu
    hd = jax.nn.relu(z @ params["w_dec"] + params["b_dec"])
    x_approx = jax.nn.sigmoid(hd @ params["w_out"] + params["b_out"])
    return x_approx, mu, logvar


def vae_reference_recipe(x, params, eps):
    """Reference with the same mixed-precision recipe as the kernel:
    bf16 MXU for enc/dec/out, f32 for the latent head, bf16 output."""
    def bdot(a, w):
        return jnp.dot(a.astype(jnp.bfloat16), w.astype(jnp.bfloat16),
                       preferred_element_type=jnp.float32)
    h = jax.nn.relu(bdot(x, params["w_enc"]) + params["b_enc"])
    mu = h @ params["w_mu"] + params["b_mu"]
    logvar = h @ params["w_var"] + params["b_var"]
    z = eps * jnp.exp(0.5 * logvar) + mu
    hd = jax.nn.relu(bdot(z, params["w_dec"]) + params["b_dec"])
    x_approx = jax.nn.sigmoid(bdot(hd, params["w_out"]) + params["b_out"])
    return x_approx.astype(jnp.bfloat16), mu, logvar


if __name__ == "__main__":
    # Small shapes consistent with the MLP VAE: x is (batch, D_in)
    B, D_in, D_enc, D_z, D_dec, D_out = 8, 64, 32, 16, 32, 64

    key = jax.random.PRNGKey(0)
    k_params, k_x, k_eps = jax.random.split(key, 3)

    params = init_params(k_params, D_in, D_enc, D_z, D_dec, D_out)
    x = jax.random.uniform(k_x, (B, D_in), jnp.float32)      # MNIST-like in [0,1)
    eps = jax.random.normal(k_eps, (B, D_z), jnp.float32)    # torch.randn_like(std)

    x_approx, mu, logvar = vae_forward(x, params, eps)
    jax.block_until_ready((x_approx, mu, logvar))
    x_approx_f32 = x_approx.astype(jnp.float32)

    # Tight check vs. a reference using the same mixed-precision recipe.
    rb_x, rb_mu, rb_lv = vae_reference_recipe(x, params, eps)
    assert jnp.allclose(x_approx_f32, rb_x.astype(jnp.float32), atol=1e-2, rtol=1e-2)
    assert jnp.allclose(mu, rb_mu, atol=2e-3, rtol=2e-3)
    assert jnp.allclose(logvar, rb_lv, atol=2e-3, rtol=2e-3)

    # Loose check vs. the pure-f32 PyTorch-equivalent reference.
    rf_x, rf_mu, rf_lv = vae_reference_f32(x, params, eps)
    assert jnp.allclose(x_approx_f32, rf_x, atol=5e-2, rtol=5e-2)
    assert jnp.allclose(mu, rf_mu, atol=5e-2, rtol=5e-2)
    assert jnp.allclose(logvar, rf_lv, atol=5e-2, rtol=5e-2)

    print("KERNEL_OK")
</pallas_src>

<mosaic_0001>
module attributes {stable_mosaic.version = 11 : i64} {
  func.func @_vae_kernel(%arg0: i32, %arg1: memref<16x128xf32, #tpu.memory_space<vmem>>, %arg2: memref<128x128xbf16, #tpu.memory_space<vmem>>, %arg3: memref<1x128xf32, #tpu.memory_space<vmem>>, %arg4: memref<128x256xf32, #tpu.memory_space<vmem>>, %arg5: memref<1x256xf32, #tpu.memory_space<vmem>>, %arg6: memref<128x128xbf16, #tpu.memory_space<vmem>>, %arg7: memref<1x128xf32, #tpu.memory_space<vmem>>, %arg8: memref<128x128xbf16, #tpu.memory_space<vmem>>, %arg9: memref<1x128xf32, #tpu.memory_space<vmem>>, %arg10: memref<16x128xf32, #tpu.memory_space<vmem>>, %arg11: memref<16x128xbf16, #tpu.memory_space<vmem>>, %arg12: memref<16x256xf32, #tpu.memory_space<vmem>>) attributes {dimension_semantics = [#tpu.dimension_semantics<parallel>], iteration_bounds = array<i64: 1>, scalar_prefetch = 0 : i64, scratch_operands = 0 : i64, tpu.core_type = #tpu.core_type<tc>, window_params = [{transform_indices = @transform_0, window_bounds = array<i64: 16, 128>}, {pipeline_mode = #tpu.pipeline_mode<synchronous>, transform_indices = @transform_1, window_bounds = array<i64: 128, 128>}, {pipeline_mode = #tpu.pipeline_mode<synchronous>, transform_indices = @transform_2, window_bounds = array<i64: 1, 128>}, {pipeline_mode = #tpu.pipeline_mode<synchronous>, transform_indices = @transform_3, window_bounds = array<i64: 128, 256>}, {pipeline_mode = #tpu.pipeline_mode<synchronous>, transform_indices = @transform_4, window_bounds = array<i64: 1, 256>}, {pipeline_mode = #tpu.pipeline_mode<synchronous>, transform_indices = @transform_5, window_bounds = array<i64: 128, 128>}, {pipeline_mode = #tpu.pipeline_mode<synchronous>, transform_indices = @transform_6, window_bounds = array<i64: 1, 128>}, {pipeline_mode = #tpu.pipeline_mode<synchronous>, transform_indices = @transform_7, window_bounds = array<i64: 128, 128>}, {pipeline_mode = #tpu.pipeline_mode<synchronous>, transform_indices = @transform_8, window_bounds = array<i64: 1, 128>}, {transform_indices = @transform_9, window_bounds = array<i64: 16, 128>}, {transform_indices = @transform_10, window_bounds = array<i64: 16, 128>}, {transform_indices = @transform_11, window_bounds = array<i64: 16, 256>}]} {
    %c0 = arith.constant 0 : index
    %c0_0 = arith.constant 0 : index
    %0 = vector.load %arg1[%c0, %c0_0] : memref<16x128xf32, #tpu.memory_space<vmem>>, vector<16x128xf32>
    %1 = arith.truncf %0 : vector<16x128xf32> to vector<16x128xbf16>
    %c0_1 = arith.constant 0 : index
    %c0_2 = arith.constant 0 : index
    %2 = vector.load %arg2[%c0_1, %c0_2] : memref<128x128xbf16, #tpu.memory_space<vmem>>, vector<128x128xbf16>
    %cst = arith.constant dense<0.000000e+00> : vector<16x128xf32>
    %3 = tpu.matmul %1, %2, %cst {dimension_numbers = #tpu.dot_dimension_numbers<[1], [0], [0], [1], [0, 0, 1, 1], [], []>} : vector<16x128xbf16>, vector<128x128xbf16>, vector<16x128xf32> -> vector<16x128xf32>
    %c0_3 = arith.constant 0 : index
    %c0_4 = arith.constant 0 : index
    %4 = vector.load %arg3[%c0_3, %c0_4] : memref<1x128xf32, #tpu.memory_space<vmem>>, vector<1x128xf32>
    %5 = vector.broadcast %4 : vector<1x128xf32> to vector<16x128xf32>
    %6 = arith.addf %3, %5 : vector<16x128xf32>
    %cst_5 = arith.constant 0.000000e+00 : f32
    %7 = vector.broadcast %cst_5 : f32 to vector<16x128xf32>
    %8 = arith.maximumf %6, %7 : vector<16x128xf32>
    %c0_6 = arith.constant 0 : index
    %c0_7 = arith.constant 0 : index
    %9 = vector.load %arg4[%c0_6, %c0_7] : memref<128x256xf32, #tpu.memory_space<vmem>>, vector<128x256xf32>
    %cst_8 = arith.constant dense<0.000000e+00> : vector<16x256xf32>
    %10 = tpu.matmul %8, %9, %cst_8 {dimension_numbers = #tpu.dot_dimension_numbers<[1], [0], [0], [1], [0, 0, 1, 1], [], []>} : vector<16x128xf32>, vector<128x256xf32>, vector<16x256xf32> -> vector<16x256xf32>
    %c0_9 = arith.constant 0 : index
    %c0_10 = arith.constant 0 : index
    %11 = vector.load %arg5[%c0_9, %c0_10] : memref<1x256xf32, #tpu.memory_space<vmem>>, vector<1x256xf32>
    %12 = vector.broadcast %11 : vector<1x256xf32> to vector<16x256xf32>
    %13 = arith.addf %10, %12 : vector<16x256xf32>
    %14 = vector.extract_strided_slice %13 {offsets = [0, 0], sizes = [16, 128], strides = [1, 1]} : vector<16x256xf32> to vector<16x128xf32>
    %15 = vector.extract_strided_slice %13 {offsets = [0, 128], sizes = [16, 128], strides = [1, 1]} : vector<16x256xf32> to vector<16x128xf32>
    %c0_11 = arith.constant 0 : index
    %c0_12 = arith.constant 0 : index
    %16 = vector.load %arg10[%c0_11, %c0_12] : memref<16x128xf32, #tpu.memory_space<vmem>>, vector<16x128xf32>
    %cst_13 = arith.constant 5.000000e-01 : f32
    %17 = vector.broadcast %cst_13 : f32 to vector<16x128xf32>
    %18 = arith.mulf %17, %15 : vector<16x128xf32>
    %19 = math.exp %18 : vector<16x128xf32>
    %20 = arith.mulf %16, %19 : vector<16x128xf32>
    %21 = arith.addf %20, %14 : vector<16x128xf32>
    %22 = arith.truncf %21 : vector<16x128xf32> to vector<16x128xbf16>
    %c0_14 = arith.constant 0 : index
    %c0_15 = arith.constant 0 : index
    %23 = vector.load %arg6[%c0_14, %c0_15] : memref<128x128xbf16, #tpu.memory_space<vmem>>, vector<128x128xbf16>
    %cst_16 = arith.constant dense<0.000000e+00> : vector<16x128xf32>
    %24 = tpu.matmul %22, %23, %cst_16 {dimension_numbers = #tpu.dot_dimension_numbers<[1], [0], [0], [1], [0, 0, 1, 1], [], []>} : vector<16x128xbf16>, vector<128x128xbf16>, vector<16x128xf32> -> vector<16x128xf32>
    %c0_17 = arith.constant 0 : index
    %c0_18 = arith.constant 0 : index
    %25 = vector.load %arg7[%c0_17, %c0_18] : memref<1x128xf32, #tpu.memory_space<vmem>>, vector<1x128xf32>
    %26 = vector.broadcast %25 : vector<1x128xf32> to vector<16x128xf32>
    %27 = arith.addf %24, %26 : vector<16x128xf32>
    %cst_19 = arith.constant 0.000000e+00 : f32
    %28 = vector.broadcast %cst_19 : f32 to vector<16x128xf32>
    %29 = arith.maximumf %27, %28 : vector<16x128xf32>
    %30 = arith.truncf %29 : vector<16x128xf32> to vector<16x128xbf16>
    %c0_20 = arith.constant 0 : index
    %c0_21 = arith.constant 0 : index
    %31 = vector.load %arg8[%c0_20, %c0_21] : memref<128x128xbf16, #tpu.memory_space<vmem>>, vector<128x128xbf16>
    %cst_22 = arith.constant dense<0.000000e+00> : vector<16x128xf32>
    %32 = tpu.matmul %30, %31, %cst_22 {dimension_numbers = #tpu.dot_dimension_numbers<[1], [0], [0], [1], [0, 0, 1, 1], [], []>} : vector<16x128xbf16>, vector<128x128xbf16>, vector<16x128xf32> -> vector<16x128xf32>
    %c0_23 = arith.constant 0 : index
    %c0_24 = arith.constant 0 : index
    %33 = vector.load %arg9[%c0_23, %c0_24] : memref<1x128xf32, #tpu.memory_space<vmem>>, vector<1x128xf32>
    %34 = vector.broadcast %33 : vector<1x128xf32> to vector<16x128xf32>
    %35 = arith.addf %32, %34 : vector<16x128xf32>
    %36 = arith.negf %35 : vector<16x128xf32>
    %37 = math.exp %36 : vector<16x128xf32>
    %cst_25 = arith.constant 1.000000e+00 : f32
    %38 = vector.broadcast %cst_25 : f32 to vector<16x128xf32>
    %39 = arith.addf %38, %37 : vector<16x128xf32>
    %40 = arith.divf %38, %39 : vector<16x128xf32>
    %41 = arith.truncf %40 : vector<16x128xf32> to vector<16x128xbf16>
    %c0_26 = arith.constant 0 : index
    %c0_27 = arith.constant 0 : index
    %42 = vector.load %arg11[%c0_26, %c0_27] : memref<16x128xbf16, #tpu.memory_space<vmem>>, vector<16x128xbf16>
    tpu.vector_store %arg11[%c0_26, %c0_27], %41 {strides = array<i32>} : memref<16x128xbf16, #tpu.memory_space<vmem>>, vector<16x128xbf16>,
    %c0_28 = arith.constant 0 : index
    %c0_29 = arith.constant 0 : index
    %43 = vector.load %arg12[%c0_28, %c0_29] : memref<16x256xf32, #tpu.memory_space<vmem>>, vector<16x256xf32>
    tpu.vector_store %arg12[%c0_28, %c0_29], %13 {strides = array<i32>} : memref<16x256xf32, #tpu.memory_space<vmem>>, vector<16x256xf32>,
    return
  }
  func.func @transform_0(%arg0: i32) -> (i32, i32) {
    %c0_i32 = arith.constant 0 : i32
    %c0_i32_0 = arith.constant 0 : i32
    return %arg0, %c0_i32 : i32, i32
  }
  func.func @transform_1(%arg0: i32) -> (i32, i32) {
    %c0_i32 = arith.constant 0 : i32
    %c0_i32_0 = arith.constant 0 : i32
    %c0_i32_1 = arith.constant 0 : i32
    return %c0_i32, %c0_i32_0 : i32, i32
  }
  func.func @transform_2(%arg0: i32) -> (i32, i32) {
    %c0_i32 = arith.constant 0 : i32
    %c0_i32_0 = arith.constant 0 : i32
    %c0_i32_1 = arith.constant 0 : i32
    return %c0_i32, %c0_i32_0 : i32, i32
  }
  func.func @transform_3(%arg0: i32) -> (i32, i32) {
    %c0_i32 = arith.constant 0 : i32
    %c0_i32_0 = arith.constant 0 : i32
    %c0_i32_1 = arith.constant 0 : i32
    return %c0_i32, %c0_i32_0 : i32, i32
  }
  func.func @transform_4(%arg0: i32) -> (i32, i32) {
    %c0_i32 = arith.constant 0 : i32
    %c0_i32_0 = arith.constant 0 : i32
    %c0_i32_1 = arith.constant 0 : i32
    return %c0_i32, %c0_i32_0 : i32, i32
  }
  func.func @transform_5(%arg0: i32) -> (i32, i32) {
    %c0_i32 = arith.constant 0 : i32
    %c0_i32_0 = arith.constant 0 : i32
    %c0_i32_1 = arith.constant 0 : i32
    return %c0_i32, %c0_i32_0 : i32, i32
  }
  func.func @transform_6(%arg0: i32) -> (i32, i32) {
    %c0_i32 = arith.constant 0 : i32
    %c0_i32_0 = arith.constant 0 : i32
    %c0_i32_1 = arith.constant 0 : i32
    return %c0_i32, %c0_i32_0 : i32, i32
  }
  func.func @transform_7(%arg0: i32) -> (i32, i32) {
    %c0_i32 = arith.constant 0 : i32
    %c0_i32_0 = arith.constant 0 : i32
    %c0_i32_1 = arith.constant 0 : i32
    return %c0_i32, %c0_i32_0 : i32, i32
  }
  func.func @transform_8(%arg0: i32) -> (i32, i32) {
    %c0_i32 = arith.constant 0 : i32
    %c0_i32_0 = arith.constant 0 : i32
    %c0_i32_1 = arith.constant 0 : i32
    return %c0_i32, %c0_i32_0 : i32, i32
  }
  func.func @transform_9(%arg0: i32) -> (i32, i32) {
    %c0_i32 = arith.constant 0 : i32
    %c0_i32_0 = arith.constant 0 : i32
    return %arg0, %c0_i32 : i32, i32
  }
  func.func @transform_10(%arg0: i32) -> (i32, i32) {
    %c0_i32 = arith.constant 0 : i32
    %c0_i32_0 = arith.constant 0 : i32
    return %arg0, %c0_i32 : i32, i32
  }
  func.func @transform_11(%arg0: i32) -> (i32, i32) {
    %c0_i32 = arith.constant 0 : i32
    %c0_i32_0 = arith.constant 0 : i32
    return %arg0, %c0_i32 : i32, i32
  }
}

</mosaic_0001>

<bundles_post_ra>
// kernel: tpu_custom_call.1
= control target key start
LH: loop header
LB: loop body
LE: loop exit
PB: predicated region body
PF: predicated region fallthrough
CT: control target
= control target key end

     0   :  { %17 = vsyncpa [#allocation3], 0  ;;  %s1058_s0 = inlined_call_operand.hbm [shape: f32[16,128], index: 0, kind: input, shape index: {}]   ;;  %s1059_s1 = inlined_call_operand.hbm [shape: bf16[128,128], index: 1, kind: input, shape index: {}]   ;;  %s1060_s2 = inlined_call_operand.vmem [shape: f32[1,128], index: 2, kind: input, shape index: {}]   ;;  %s1061_s3 = inlined_call_operand.hbm [shape: f32[128,256], index: 3, kind: input, shape index: {}]   ;;  %s1062_s4 = inlined_call_operand.vmem [shape: f32[1,256], index: 4, kind: input, shape index: {}]   ;;  %s1063_s5 = inlined_call_operand.hbm [shape: bf16[128,128], index: 5, kind: input, shape index: {}]   ;;  %s1064_s6 = inlined_call_operand.vmem [shape: f32[1,128], index: 6, kind: input, shape index: {}]   ;;  %s1065_s7 = inlined_call_operand.hbm [shape: bf16[128,128], index: 7, kind: input, shape index: {}]   ;;  %s1066_s8 = inlined_call_operand.vmem [shape: f32[1,128], index: 8, kind: input, shape index: {}]   ;;  %s1067_s9 = inlined_call_operand.hbm [shape: f32[16,128], index: 9, kind: input, shape index: {}]   ;;  %s1068_s10 = inlined_call_operand.hbm [shape: bf16[16,128], index: 10, kind: output, shape index: {0}]   ;;  %s1069_s11 = inlined_call_operand.hbm [shape: f32[16,256], index: 11, kind: output, shape index: {1}]  }
   0x1   :  { %18 = vsyncpa [#allocation6], 0 }
   0x2   :  { %19 = vsyncpa [#allocation9], 0 }
   0x3   :  { %20 = vsyncpa [#allocation12], 0 }
   0x4   :  { %21 = vsyncpa [#allocation4], 0  ;;  %s40_s19 = sshll.u32 %s1059_s1, 4  ;;  %s41_s19 = int_to_ptr.hbm [resolvable:$true] %s40_s19 }
   0x5   :  { %22 = vsyncpa [#allocation15], 0  ;;  %s930_s20 = smov [#allocation5]   ;;  %s70_s24 = sshll.u32 %s1063_s5, 4  ;;  %s71_s24 = int_to_ptr.hbm [resolvable:$true] %s70_s24 }
   0x6   :  { %s42_s21 = sshll.u32 %s930_s20, 4  ;;  %s931_s25 = smov 64   ;;  %s43_s21 = int_to_ptr.vmem [resolvable:$true] %s42_s21 }
   0x7   :  { %s932_s26 = smov 4   ;;  %s933_s27 = smov [#allocation8]  }
   0x8   :  { %48 = dma.hbm_to_vmem [thread:$0]  %s41_s19, 1024, %s43_s21, [#allocation6], %s931_s25, %s931_s25, %s932_s26  }
   0x9   :  { %s72_s28 = sshll.u32 %s933_s27, 4  ;;  %s27_s30 = sshll.u32 %s1058_s0, 4  ;;  %s73_s28 = int_to_ptr.vmem [resolvable:$true] %s72_s28  ;;  %s28_s30 = int_to_ptr.hbm [resolvable:$true] %s27_s30 }
   0xa   :  { %78 = dma.hbm_to_vmem [thread:$0]  %s71_s24, 1024, %s73_s28, [#allocation9], %s931_s25, %s931_s25, %s932_s26  }
   0xb   :  { %s934_s5 = smov [#allocation2]   ;;  %s55_s15 = sshll.u32 %s1061_s3, 4  ;;  %s56_s15 = int_to_ptr.hbm [resolvable:$true] %s55_s15 }
   0xc   :  { %s29_s12 = sshll.u32 %s934_s5, 4  ;;  %s935_s16 = smov 128   ;;  %s30_s12 = int_to_ptr.vmem [resolvable:$true] %s29_s12 }
   0xd   :  { %s936_s17 = smov 8   ;;  %s937_s18 = smov [#allocation7]  }
   0xe   :  { %35 = dma.hbm_to_vmem [thread:$0]  %s28_s30, 256, %s30_s12, [#allocation3], %s935_s16, %s935_s16, %s936_s17  }
   0xf   :  { %s57_s19 = sshll.u32 %s937_s18, 4  ;;  %s938_s0 = smov 256   ;;  %s58_s19 = int_to_ptr.vmem [resolvable:$true] %s57_s19 }
  0x10   :  { %s939_s20 = smov 16   ;;  %s85_s23 = sshll.u32 %s1065_s7, 4  ;;  %s86_s23 = int_to_ptr.hbm [resolvable:$true] %s85_s23 }
  0x11   :  { %63 = dma.hbm_to_vmem [thread:$0]  %s56_s15, 4096, %s58_s19, [#allocation6], %s938_s0, %s938_s0, %s939_s20  }
  0x12   :  { %s940_s24 = smov [#allocation10]   ;;  %s100_s29 = sshll.u32 %s1067_s9, 4  ;;  %s101_s29 = int_to_ptr.hbm [resolvable:$true] %s100_s29 }
  0x13   :  { %s87_s3 = sshll.u32 %s940_s24, 4  ;;  %s941_s1 = smov [#allocation11]   ;;  %s88_s3 = int_to_ptr.vmem [resolvable:$true] %s87_s3 }
  0x14   :  { %93 = dma.hbm_to_vmem [thread:$0]  %s86_s23, 1024, %s88_s3, [#allocation9], %s931_s25, %s931_s25, %s932_s26  }
  0x15   :  { %s102_s30 = sshll.u32 %s941_s1, 4  ;;  %s103_s30 = int_to_ptr.vmem [resolvable:$true] %s102_s30 }
  0x16   :  { %108 = dma.hbm_to_vmem [thread:$0]  %s101_s29, 256, %s103_s30, [#allocation12], %s935_s16, %s935_s16, %s936_s17  }
  0x17   :  { %918 = dma.done.wait [#allocation3], 256  }
  0x18   :  { %919 = vsyncadd [#allocation3], 4294967040 }
  0x19   :  { %920 = dma.done.wait [#allocation6], 5120  }
  0x1a   :  { %921 = vsyncadd [#allocation6], 4294962176 }
  0x1b   :  { %922 = dma.done.wait [#allocation9], 2048  }
  0x1c   :  { %923 = vsyncadd [#allocation9], 4294965248 }
  0x1d   :  { %924 = dma.done.wait [#allocation12], 256  }
  0x1e   :  { %925 = vsyncadd [#allocation12], 4294967040  ;;  %v675_v0 = vld [vmem:[#allocation5 + $0x38] sm:$0xff]  ;;  %v674_v1 = vld [vmem:[#allocation5 + $0x30] sm:$0xff]  ;;  %s942_s13 = smov [#allocation14]   ;;  %s549_s17 = sshll.u32 %s1069_s11, 4  ;;  %s550_s17 = int_to_ptr.hbm [resolvable:$true] %s549_s17 }
  0x1f   :  { %204 = vmatpush.bf16.msra.mxu0 %v675_v0  ;;  %v250_v2 = vld [vmem:[#allocation7 + $0xf0] sm:$0xff]  ;;  %v251_v3 = vld [vmem:[#allocation7 + $0xf8] sm:$0xff]  ;;  %v248_v4 = vld [vmem:[#allocation7 + $0xe0] sm:$0xff]  ;;  %s547_s14 = sshll.u32 %s942_s13, 4  ;;  %s548_s14 = int_to_ptr.vmem [resolvable:$true] %s547_s14 }
  0x20   :  { %258 = vmatpush.msra.mxu1 %v250_v2  ;;  %281 = vmatpush.msra.mxu2 %v251_v3  ;;  %v249_v5 = vld [vmem:[#allocation7 + $0xe8] sm:$0xff]  ;;  %v246_v6 = vld [vmem:[#allocation7 + $0xd0] sm:$0xff]  ;;  %v247_v8 = vld [vmem:[#allocation7 + $0xd8] sm:$0xff] }
  0x21   :  { %v673_v7 = vld [vmem:[#allocation5 + $0x28] sm:$0xff]  ;;  %v244_v9 = vld [vmem:[#allocation7 + $0xc0] sm:$0xff]  ;;  %v242_v11 = vld [vmem:[#allocation7 + $0xb0] sm:$0xff] }
  0x22   :  { %259 = vmatpush.msra.mxu1 %v248_v4  ;;  %282 = vmatpush.msra.mxu2 %v249_v5  ;;  %v245_v10 = vld [vmem:[#allocation7 + $0xc8] sm:$0xff]  ;;  %v672_v12 = vld [vmem:[#allocation5 + $0x20] sm:$0xff]  ;;  %v243_v13 = vld [vmem:[#allocation7 + $0xb8] sm:$0xff] }
  0x23   :  { %205 = vmatpush.bf16.msra.mxu0 %v674_v1  ;;  %v240_v14 = vld [vmem:[#allocation7 + $0xa0] sm:$0xff]  ;;  %v241_v15 = vld [vmem:[#allocation7 + $0xa8] sm:$0xff]  ;;  %v238_v16 = vld [vmem:[#allocation7 + $0x90] sm:$0xff] }
  0x24   :  { %260 = vmatpush.msra.mxu1 %v246_v6  ;;  %283 = vmatpush.msra.mxu2 %v247_v8  ;;  %v671_v17 = vld [vmem:[#allocation5 + $0x18] sm:$0xff]  ;;  %v236_v19 = vld [vmem:[#allocation7 + $0x80] sm:$0xff]  ;;  %v237_v20 = vld [vmem:[#allocation7 + $0x88] sm:$0xff] }
  0x25   :  { %v239_v18 = vld [vmem:[#allocation7 + $0x98] sm:$0xff]  ;;  %v234_v21 = vld [vmem:[#allocation7 + $0x70] sm:$0xff]  ;;  %v232_v24 = vld [vmem:[#allocation7 + $0x60] sm:$0xff] }
  0x26   :  { %261 = vmatpush.msra.mxu1 %v244_v9  ;;  %284 = vmatpush.msra.mxu2 %v245_v10  ;;  %v670_v22 = vld [vmem:[#allocation5 + $0x10] sm:$0xff]  ;;  %v235_v23 = vld [vmem:[#allocation7 + $0x78] sm:$0xff]  ;;  %v233_v25 = vld [vmem:[#allocation7 + $0x68] sm:$0xff] }
  0x27   :  { %206 = vmatpush.bf16.msra.mxu0 %v673_v7  ;;  %v230_v26 = vld [vmem:[#allocation7 + $0x50] sm:$0xff]  ;;  %v669_v27 = vld [vmem:[#allocation5 + $0x8] sm:$0xff]  ;;  %v231_v28 = vld [vmem:[#allocation7 + $0x58] sm:$0xff] }
  0x28   :  { %262 = vmatpush.msra.mxu1 %v242_v11  ;;  %285 = vmatpush.msra.mxu2 %v243_v13  ;;  %v228_v29 = vld [vmem:[#allocation7 + $0x40] sm:$0xff]  ;;  %v229_v30 = vld [vmem:[#allocation7 + $0x48] sm:$0xff]  ;;  %v226_v32 = vld [vmem:[#allocation7 + $0x30] sm:$0xff] }
  0x29   :  { %v668_v31 = vld [vmem:[#allocation5] sm:$0xff]  ;;  %v133_v33 = vld [vmem:[#allocation2] sm:$0xff]  ;;  %v134_v34 = vld [vmem:[#allocation2 + $0x8] sm:$0xff] }
  0x2a   :  { %263 = vmatpush.msra.mxu1 %v240_v14  ;;  %286 = vmatpush.msra.mxu2 %v241_v15  ;;  %v227_v35 = vld [vmem:[#allocation7 + $0x38] sm:$0xff]  ;;  %v135_v36 = vpack.c.bf16 %v134_v34, %v133_v33  ;;  %v224_v37 = vld [vmem:[#allocation7 + $0x20] sm:$0xff]  ;;  %v225_v38 = vld [vmem:[#allocation7 + $0x28] sm:$0xff] }
  0x2b   :  { %207 = vmatpush.bf16.msra.mxu0 %v672_v12  ;;  %v222_v39 = vld [vmem:[#allocation7 + $0x10] sm:$0xff]  ;;  %v223_v40 = vld [vmem:[#allocation7 + $0x18] sm:$0xff]  ;;  %v220_v41 = vld [vmem:[#allocation7] sm:$0xff] }
  0x2c   :  { %264 = vmatpush.msra.mxu1 %v238_v16  ;;  %287 = vmatpush.msra.mxu2 %v239_v18  ;;  %v221_v42 = vld [vmem:[#allocation7 + $0x8] sm:$0xff]  ;;  %v711_v43 = vld [vmem:[%s1060_s2] ss:$0 sm:$0xff]  ;;  %v683_v50 = vld [vmem:[#allocation8 + $0x38] sm:$0xff] }
  0x2d   :  { %385 = vmatpush.bf16.msra.mxu3 %v683_v50  ;;  %v682_v51 = vld [vmem:[#allocation8 + $0x30] sm:$0xff]  ;;  %v681_v52 = vld [vmem:[#allocation8 + $0x28] sm:$0xff]  ;;  %v680_v53 = vld [vmem:[#allocation8 + $0x20] sm:$0xff] }
  0x2e   :  { %265 = vmatpush.msra.mxu1 %v236_v19  ;;  %288 = vmatpush.msra.mxu2 %v237_v20  ;;  %v679_v54 = vld [vmem:[#allocation8 + $0x18] sm:$0xff]  ;;  %v678_v55 = vld [vmem:[#allocation8 + $0x10] sm:$0xff]  ;;  %v677_v56 = vld [vmem:[#allocation8 + $0x8] sm:$0xff] }
  0x2f   :  { %208 = vmatpush.bf16.msra.mxu0 %v671_v17  ;;  %v252_v57 = vld [vmem:[%s1062_s4] sm:$0x3]  ;;  %v676_v58 = vld [vmem:[#allocation8] sm:$0xff]  ;;  %v691_v62 = vld [vmem:[#allocation10 + $0x38] sm:$0xff] }
  0x30   :  { %266 = vmatpush.msra.mxu1 %v234_v21  ;;  %289 = vmatpush.msra.mxu2 %v235_v23  ;;  %v254_v59 = vperm.slane %v252_v57, 0  ;;  %v255_v63 = vperm.slane %v252_v57, 1  ;;  %v690_v0 = vld [vmem:[#allocation10 + $0x30] sm:$0xff]  ;;  %v689_v4 = vld [vmem:[#allocation10 + $0x28] sm:$0xff]  ;;  %v688_v7 = vld [vmem:[#allocation10 + $0x20] sm:$0xff] }
  0x31   :  { %386 = vmatpush.bf16.msra.mxu3 %v682_v51  ;;  %v304_v14 = vld [vmem:[#allocation11] sm:$0xff]  ;;  %v305_v15 = vld [vmem:[#allocation11 + $0x8] sm:$0xff]  ;;  %v686_v23 = vld [vmem:[#allocation10 + $0x10] sm:$0xff] }
  0x32   :  { %267 = vmatpush.msra.mxu1 %v232_v24  ;;  %290 = vmatpush.msra.mxu2 %v233_v25  ;;  %v685_v24 = vld [vmem:[#allocation10 + $0x8] sm:$0xff]  ;;  %v684_v25 = vld [vmem:[#allocation10] sm:$0xff]  ;;  %v713_v34 = vld [vmem:[%s1066_s8] ss:$0 sm:$0xff]  ;;  %s943_s8 = smov [#allocation13]  }
  0x33   :  { %209 = vmatpush.bf16.msra.mxu0 %v670_v22  ;;  %v687_v22 = vld [vmem:[#allocation10 + $0x18] sm:$0xff]  ;;  %s534_s11 = sshll.u32 %s943_s8, 4  ;;  %s535_s11 = int_to_ptr.vmem [resolvable:$true] %s534_s11 }
  0x34   :  { %268 = vmatpush.msra.mxu1 %v230_v26  ;;  %291 = vmatpush.msra.mxu2 %v231_v28 }
  0x35   :  { %387 = vmatpush.bf16.msra.mxu3 %v681_v52 }
  0x36   :  { %269 = vmatpush.msra.mxu1 %v228_v29  ;;  %292 = vmatpush.msra.mxu2 %v229_v30 }
  0x37   :  { %210 = vmatpush.bf16.msra.mxu0 %v669_v27  ;;  %v712_v27 = vld [vmem:[%s1064_s6] ss:$0 sm:$0xff] }
  0x38   :  { %270 = vmatpush.msra.mxu1 %v226_v32  ;;  %293 = vmatpush.msra.mxu2 %v227_v35 }
  0x39   :  { %388 = vmatpush.bf16.msra.mxu3 %v680_v53 }
  0x3a   :  { %271 = vmatpush.msra.mxu1 %v224_v37  ;;  %294 = vmatpush.msra.mxu2 %v225_v38 }
  0x3b   :  { %211 = vmatpush.bf16.msra.mxu0 %v668_v31 }
  0x3c   :  { %272 = vmatpush.msra.mxu1 %v222_v39  ;;  %295 = vmatpush.msra.mxu2 %v223_v40 }
  0x3d   :  { %389 = vmatpush.bf16.msra.mxu3 %v679_v54 }
  0x3e   :  { %212 = vmatmul.bf16.vlgmr.msra.gmra.mxu0 %v135_v36  ;;  %273 = vmatpush.msra.mxu1 %v220_v41 }
  0x3f   :  { %296 = vmatpush.msra.mxu2 %v221_v42  ;;  %470 = vmatpush.bf16.msrb.mxu0 %v691_v62 }
  0x41   :  { %390 = vmatpush.bf16.msra.mxu3 %v678_v55 }
  0x43   :  { %471 = vmatpush.bf16.msrb.mxu0 %v690_v0 }
  0x45   :  { %391 = vmatpush.bf16.msra.mxu3 %v677_v56 }
  0x47   :  { %472 = vmatpush.bf16.msrb.mxu0 %v689_v4 }
  0x49   :  { %392 = vmatpush.bf16.msra.mxu3 %v676_v58 }
  0x4b   :  { %473 = vmatpush.bf16.msrb.mxu0 %v688_v7 }
  0x4f   :  { %474 = vmatpush.bf16.msrb.mxu0 %v687_v22 }
  0x53   :  { %475 = vmatpush.bf16.msrb.mxu0 %v686_v23 }
  0x57   :  { %476 = vmatpush.bf16.msrb.mxu0 %v685_v24 }
  0x5b   :  { %477 = vmatpush.bf16.msrb.mxu0 %v684_v25 }
  0xbb   :  { %v213_v44 = vpop.f32.mrf.mxu0 }
  0xbc   :  { %v214_v45 = vadd.f32 %v711_v43, %v213_v44 }
  0xbe   :  { %v218_v46 = vmax.f32 %v214_v45, 0.0 }
  0xc0   :  { %274 = vmatmul.f32.vlgmr.msra.gmra.mxu1 %v218_v46  ;;  %297 = vmatmul.f32.vlgmr.msra.gmra.mxu2 %v218_v46 }
  0xc3   :  { %v215_v47 = vpop.f32.mrf.mxu0 }
  0xc4   :  { %v216_v48 = vadd.f32 %v711_v43, %v215_v47 }
  0xc6   :  { %v219_v49 = vmax.f32 %v216_v48, 0.0 }
  0xc8   :  { %277 = vmatmul.f32.gmra.mxu1 %v219_v49  ;;  %300 = vmatmul.f32.gmra.mxu2 %v219_v49 }
 0x13d   :  { %v275_v60 = vpop.f32.mrf.mxu1 }
 0x13e   :  { %v276_v61 = vadd.f32 %v275_v60, %v254_v59 }
 0x140   :  { %526 = vst [vmem:[#allocation14] sm:$0xff] %v276_v61 }
 0x143   :  { %v298_v1 = vpop.f32.mrf.mxu2 }
 0x144   :  { %v299_v2 = vadd.f32 %v298_v1, %v255_v63 }
 0x145   :  { %v278_v3 = vpop.f32.mrf.mxu1 }
 0x146   :  { %v306_v5 = vmul.f32 0.5, %v299_v2  ;;  %527 = vst [vmem:[#allocation14 + $0x8] sm:$0xff] %v299_v2  ;;  %v279_v6 = vadd.f32 %v278_v3, %v254_v59 }
 0x148   :  { %528 = vst [vmem:[#allocation14 + $0x10] sm:$0xff] %v279_v6  ;;  %v308_v8 = vmul.f32 1.442695, %v306_v5 }
 0x14a   :  { %714 = vpow2.f32 %v308_v8 }
 0x14b   :  { %v301_v9 = vpop.f32.mrf.mxu2 }
 0x14c   :  { %v302_v10 = vadd.f32 %v301_v9, %v255_v63 }
 0x14e   :  { %v307_v11 = vmul.f32 0.5, %v302_v10  ;;  %529 = vst [vmem:[#allocation14 + $0x18] sm:$0xff] %v302_v10 }
 0x14f   :  { %555 = dma.vmem_to_hbm [thread:$0]  %s548_s14, 512, %s550_s17, [#allocation15], %s938_s0, %s938_s0, %s939_s20  }
 0x150   :  { %v310_v12 = vmul.f32 1.442695, %v307_v11  ;;  %v715_v13 = vpop.eup %714  ;;  %s536_s20 = sshll.u32 %s1068_s10, 4  ;;  %s537_s20 = int_to_ptr.hbm [resolvable:$true] %s536_s20 }
 0x151   :  { %v312_v16 = vmul.f32 %v715_v13, %v304_v14 }
 0x152   :  { %716 = vpow2.f32 %v310_v12 }
 0x153   :  { %v314_v19 = vadd.f32 %v312_v16, %v276_v61 }
 0x158   :  { %v717_v17 = vpop.eup %716 }
 0x159   :  { %v313_v18 = vmul.f32 %v717_v17, %v305_v15 }
 0x15b   :  { %v315_v20 = vadd.f32 %v313_v18, %v279_v6 }
 0x15d   :  { %v316_v21 = vpack.c.bf16 %v315_v20, %v314_v19 }
 0x15f   :  { %393 = vmatmul.bf16.vlgmr.msra.gmra.mxu3 %v316_v21 }
 0x1e2   :  { %v394_v26 = vpop.f32.mrf.mxu3 }
 0x1e3   :  { %v395_v28 = vadd.f32 %v712_v27, %v394_v26 }
 0x1e5   :  { %v399_v31 = vmax.f32 %v395_v28, 0.0 }
 0x1ea   :  { %v396_v29 = vpop.f32.mrf.mxu3 }
 0x1eb   :  { %v397_v30 = vadd.f32 %v712_v27, %v396_v29 }
 0x1ed   :  { %v400_v32 = vmax.f32 %v397_v30, 0.0 }
 0x1ef   :  { %v401_v33 = vpack.c.bf16 %v400_v32, %v399_v31 }
 0x1f1   :  { %478 = vmatmul.bf16.vlgmr.msrb.gmra.mxu0 %v401_v33 }
 0x26e   :  { %v479_v35 = vpop.f32.mrf.mxu0 }
 0x26f   :  { %v480_v36 = vadd.f32 %v713_v34, %v479_v35 }
 0x271   :  { %v666_v37 = vmul.f32 -1.442695, %v480_v36 }
 0x273   :  { %718 = vpow2.f32 %v666_v37 }
 0x276   :  { %v481_v38 = vpop.f32.mrf.mxu0 }
 0x277   :  { %v482_v39 = vadd.f32 %v713_v34, %v481_v38 }
 0x279   :  { %v719_v40 = vpop.eup %718  ;;  %v667_v41 = vmul.f32 -1.442695, %v482_v39 }
 0x27a   :  { %v490_v42 = vadd.f32 1.0, %v719_v40 }
 0x27b   :  { %720 = vpow2.f32 %v667_v41 }
 0x27c   :  { %722 = vrcp.f32 %v490_v42  ;;  %vm497_vm1 = vweird.f32 %v490_v42  ;;  %v503_v53 = vand.u32 2147483648, %v490_v42  ;;  %v501_v55 = vand.u32 2147483647, %v490_v42 }
 0x27e   :  { %v504_v60 = vor.u32 1.1754944e-38, %v503_v53  ;;  %vm502_vm6 = vcmp.eq.f32.partialorder %v501_v55, 8.507059e+37 }
 0x281   :  { %v721_v43 = vpop.eup %720 }
 0x282   :  { %v723_v44 = vpop.eup %722  ;;  %v491_v45 = vadd.f32 1.0, %v721_v43 }
 0x283   :  { %v493_v46 = vmul.f32 %v723_v44, %v490_v42  ;;  %vm498_vm0 = vweird.f32 %v723_v44 }
 0x284   :  { %724 = vrcp.f32 %v491_v45  ;;  %v518_v54 = vand.u32 2147483648, %v491_v45  ;;  %v516_v57 = vand.u32 2147483647, %v491_v45  ;;  %vm499_vm3 = vmor %vm497_vm1, %vm498_vm0  ;;  %vm512_vm4 = vweird.f32 %v491_v45 }
 0x285   :  { %v494_v47 = vsub.f32 1.0, %v493_v46 }
 0x286   :  { %v519_v61 = vor.u32 1.1754944e-38, %v518_v54  ;;  %vm517_vm7 = vcmp.eq.f32.partialorder %v516_v57, 8.507059e+37 }
 0x287   :  { %v495_v48 = vmul.f32 %v723_v44, %v494_v47 }
 0x289   :  { %v496_v52 = vadd.f32 %v723_v44, %v495_v48 }
 0x28a   :  { %v725_v49 = vpop.eup %724 }
 0x28b   :  { %v508_v50 = vmul.f32 %v725_v49, %v491_v45  ;;  %vm513_vm2 = vweird.f32 %v725_v49  ;;  %v500_v58 = vsel %vm499_vm3, %v723_v44, %v496_v52 }
 0x28c   :  { %vm514_vm5 = vmor %vm512_vm4, %vm513_vm2  ;;  %v505_v63 = vsel %vm502_vm6, %v504_v60, %v500_v58 }
 0x28d   :  { %v509_v51 = vsub.f32 1.0, %v508_v50 }
 0x28f   :  { %v510_v56 = vmul.f32 %v725_v49, %v509_v51 }
 0x291   :  { %v511_v59 = vadd.f32 %v725_v49, %v510_v56 }
 0x293   :  { %v515_v62 = vsel %vm514_vm5, %v725_v49, %v511_v59 }
 0x294   :  { %v520_v0 = vsel %vm517_vm7, %v519_v61, %v515_v62 }
 0x295   :  { %v695_v1 = vpack.c.bf16 %v520_v0, %v505_v63 }
 0x297   :  { %696 = vst [vmem:[#allocation13] sm:$0xff] %v695_v1  }
 0x298   :  { %542 = dma.vmem_to_hbm [thread:$0]  %s535_s11, 128, %s537_s20, [#allocation4], %s931_s25, %s931_s25, %s932_s26  }
 0x299   :  { %926 = dma.done.wait [#allocation4], 128  }
 0x29a   :  { %927 = vsyncadd [#allocation4], 4294967168 }
 0x29b   :  { %928 = dma.done.wait [#allocation15], 512  }
 0x29c   :  { %929 = vsyncadd [#allocation15], 4294966784 }
 0x29d   :  { %564 = vsyncpa [#allocation3], 1 }
 0x29e   :  { %565 = vsyncpa [#allocation6], 1 }
 0x29f   :  { %566 = vsyncpa [#allocation9], 1 }
 0x2a0   :  { %567 = vsyncpa [#allocation12], 1 }
 0x2a1   :  { %568 = vsyncpa [#allocation4], 1 }
 0x2a2   :  { %569 = vsyncpa [#allocation15], 1 }

</bundles_post_ra>
